<compile_context>
chip_gen: v7x
topology: tpu7x:2x2x1
jax: 0.10.0
libtpu: 0.0.40
codegen_flags: <defaults>
</compile_context>

<pallas_src>
import functools

import jax
import jax.numpy as jnp
from jax.experimental import pallas as pl
from jax.experimental.pallas import tpu as pltpu


# ----------------------------------------------------------------------------
# In-kernel helpers
# ----------------------------------------------------------------------------
def _kwinners(x, boost, k):
    """KWinners: keep activations whose boosted value >= the k-th largest.

    k-pass running-max to enumerate distinct values in decreasing order; the
    threshold is accepted only while fewer than k elements are strictly above
    it (count-based test), so duplicated top values do not undershoot the
    threshold and an all-equal row keeps everything (matches the top_k
    threshold reference).  The count/`need` chain hangs off the max chain and
    does not lengthen the serial XLU critical path.
    """
    b = x * boost
    remaining = b
    kth = None
    for i in range(k):                                   # k is small & static
        m = jnp.max(remaining, axis=-1, keepdims=True)
        if i == 0:
            kth = m                                      # count(b > max) == 0 < k
        else:
            need = jnp.sum((b > m).astype(jnp.float32), axis=-1,
                           keepdims=True) < k
            kth = jnp.where(need, m, kth)
        if i + 1 < k:
            remaining = jnp.where(remaining >= m, -jnp.inf, remaining)
    return jnp.where(b >= kth, x, jnp.zeros_like(x))


def _mhs_mlp_kernel(x_ref,
                    w1_ref, b1_ref, bf1_ref,
                    w2_ref, b2_ref, bf2_ref,
                    wh_ref, bh_ref,
                    out_ref, *, k1, k2, n_chunks):
    tile = x_ref.shape[0]
    chunk = tile // n_chunks

    # Weights read once; (1, F) row vectors broadcast once (hoisted out of the
    # chunk loop -- JAX does not CSE broadcast_in_dim).
    w1 = w1_ref[...]
    w2 = w2_ref[...]
    wh = wh_ref[...]
    b1 = jnp.broadcast_to(b1_ref[...], (chunk, b1_ref.shape[1]))
    bf1 = jnp.broadcast_to(bf1_ref[...], (chunk, bf1_ref.shape[1]))
    b2 = jnp.broadcast_to(b2_ref[...], (chunk, b2_ref.shape[1]))
    bf2 = jnp.broadcast_to(bf2_ref[...], (chunk, bf2_ref.shape[1]))
    bh = jnp.broadcast_to(bh_ref[...], (chunk, bh_ref.shape[1]))

    # Independent row-chunks: static unrolled loop so the scheduler can
    # interleave chunk j's KWinners (XLU) chain with chunk j+-1's matmuls.
    for j in range(n_chunks):
        r0 = j * chunk
        xj = x_ref[r0:r0 + chunk, :].astype(jnp.bfloat16)   # cast after DMA

        # --- sparse linear 1 (BN folded into w/b) + kwinners ------------------
        h = jnp.dot(xj, w1, preferred_element_type=jnp.float32) + b1
        h = _kwinners(h, bf1, k1)

        # --- sparse linear 2 (BN folded) + kwinners ---------------------------
        h = jnp.dot(h.astype(jnp.bfloat16), w2,
                    preferred_element_type=jnp.float32) + b2
        h = _kwinners(h, bf2, k2)

        # --- all output heads fused into a single lane-dense matmul -----------
        o = jnp.dot(h.astype(jnp.bfloat16), wh,
                    preferred_element_type=jnp.float32) + bh
        out_ref[r0:r0 + chunk, :] = o.astype(out_ref.dtype)


# ----------------------------------------------------------------------------
# Parameter preparation (shared by kernel wrapper and reference so that the
# numerics of the folding / bf16 casts match exactly)
# ----------------------------------------------------------------------------
def _prepare_params(params):
    (w1, b1, s1, t1, bf1, w2, b2, s2, t2, bf2, wh, bh) = params
    w1f = (w1 * s1).astype(jnp.bfloat16)
    b1f = (b1 * s1 + t1).astype(jnp.float32)
    w2f = (w2 * s2).astype(jnp.bfloat16)
    b2f = (b2 * s2 + t2).astype(jnp.float32)
    return (w1f, b1f, bf1.astype(jnp.float32),
            w2f, b2f, bf2.astype(jnp.float32),
            wh.astype(jnp.bfloat16), bh.astype(jnp.float32))


def _round_up(a, b):
    return ((a + b - 1) // b) * b


def _pick_tile(n, requested):
    """Batch tile: multiple of 16, and >=2 grid steps when the batch allows
    (so v7x's two TensorCores both get work via the 'parallel' axis)."""
    requested = max(16, (int(requested) // 16) * 16)
    if n <= 16:
        return n                          # single block == full batch dim
    if n <= 2 * requested:
        return min(requested, _round_up(pl.cdiv(n, 2), 16))
    return requested


def _pick_chunks(tile):
    """Number of independent row-chunks inside the kernel body."""
    for c in (4, 2):
        if tile % (8 * c) == 0:
            return c
    return 1


# ----------------------------------------------------------------------------
# Wrapper
# ----------------------------------------------------------------------------
def multiheaded_sparse_mlp(x_nchw, params, output_dims, k_inf, tile_n=512):
    """Runs the fused forward pass; returns a list of per-head f32 outputs."""
    n = x_nchw.shape[0]
    x = x_nchw.reshape(n, -1)                      # torch Flatten; keep dtype
    in_size = x.shape[1]

    (w1f, b1f, bf1, w2f, b2f, bf2, whf, bhf) = _prepare_params(params)

    # Lane-dense fused head output: pad to a multiple of 128 with zeros so the
    # writeback uses unmasked full-lane stores; real columns sliced off below.
    out_total = whf.shape[1]
    out_pad = _round_up(out_total, 128)
    if out_pad != out_total:
        whf = jnp.pad(whf, ((0, 0), (0, out_pad - out_total)))
        bhf = jnp.pad(bhf, ((0, 0), (0, out_pad - out_total)))

    # Batch tiling (no wrapper-side pad: ragged tail tiles are masked by
    # Pallas; rows are independent so unspecified tail reads are inert).
    tile = _pick_tile(n, tile_n)
    grid = (pl.cdiv(n, tile),)
    n_chunks = _pick_chunks(tile)

    pinned = lambda shape: pl.BlockSpec(shape, lambda i: (0, 0))
    in_specs = [
        pl.BlockSpec((tile, in_size), lambda i: (i, 0)),   # x: tiled on batch
        pinned(w1f.shape), pinned(b1f.shape), pinned(bf1.shape),
        pinned(w2f.shape), pinned(b2f.shape), pinned(bf2.shape),
        pinned(whf.shape), pinned(bhf.shape),
    ]
    out_specs = pl.BlockSpec((tile, out_pad), lambda i: (i, 0))

    # Tight VMEM budget from actual buffer sizes (portable to v7x's 64 MiB):
    # double-buffered x / out tiles + (conservatively double-counted) pinned
    # operands + headroom for in-kernel temporaries and compiler scratch.
    pinned_bytes = sum(a.size * a.dtype.itemsize
                       for a in (w1f, b1f, bf1, w2f, b2f, bf2, whf, bhf))
    vmem_limit = (2 * tile * in_size * x.dtype.itemsize
                  + 2 * tile * out_pad * 2
                  + 2 * pinned_bytes
                  + (8 << 20))
    vmem_limit = int(min(max(vmem_limit, 16 << 20), 48 << 20))

    out = pl.pallas_call(
        functools.partial(_mhs_mlp_kernel, k1=k_inf[0], k2=k_inf[1],
                          n_chunks=n_chunks),
        out_shape=jax.ShapeDtypeStruct((n, out_pad), jnp.bfloat16),
        grid=grid,
        in_specs=in_specs,
        out_specs=out_specs,
        compiler_params=pltpu.CompilerParams(
            dimension_semantics=("parallel",),
            vmem_limit_bytes=vmem_limit),
    )(x, w1f, b1f, bf1, w2f, b2f, bf2, whf, bhf)

    # Drop lane padding and split into per-head tensors (f32 for callers).
    out = out[:, :out_total].astype(jnp.float32)
    outs, off = [], 0
    for d in output_dims:
        outs.append(out[:, off:off + d])
        off += d
    return outs


# ----------------------------------------------------------------------------
# Deterministic parameter construction (synthetic, mirrors module __init__)
# ----------------------------------------------------------------------------
def _sparse_mask(key, fan_in, fan_out, weight_percent_on):
    """SparseWeights-style mask: keep `weight_percent_on` fraction per output unit."""
    nnz = int(round(weight_percent_on * fan_in))
    u = jax.random.uniform(key, (fan_in, fan_out))
    rank = jnp.argsort(jnp.argsort(u, axis=0), axis=0)
    return (rank < nnz).astype(jnp.float32)


def _linear_params(key, fan_in, fan_out):
    kw, kb = jax.random.split(key)
    bound = 1.0 / jnp.sqrt(fan_in)
    w = jax.random.uniform(kw, (fan_in, fan_out), minval=-bound, maxval=bound)
    b = jax.random.uniform(kb, (1, fan_out), minval=-bound, maxval=bound)
    return w.astype(jnp.float32), b.astype(jnp.float32)


def _bn_scale_shift(key, num_feat, eps=1e-5):
    k1, k2, k3, k4 = jax.random.split(key, 4)
    gamma = 1.0 + 0.1 * jax.random.normal(k1, (1, num_feat))
    beta = 0.05 * jax.random.normal(k2, (1, num_feat))
    r_mean = 0.1 * jax.random.normal(k3, (1, num_feat))
    r_var = jax.random.uniform(k4, (1, num_feat), minval=0.5, maxval=1.5)
    scale = gamma / jnp.sqrt(r_var + eps)
    shift = beta - r_mean * scale
    return scale.astype(jnp.float32), shift.astype(jnp.float32)


def _boost_factors(num_feat, k_inf, boost_strength):
    # duty cycles start at zero; target density = k / n (nupic functional kwinners)
    duty = jnp.zeros((1, num_feat), jnp.float32)
    target_density = float(k_inf) / float(num_feat)
    return jnp.exp((target_density - duty) * boost_strength).astype(jnp.float32)


# ----------------------------------------------------------------------------
# Pure-JAX reference (uses lax.top_k) for correctness checking
# ----------------------------------------------------------------------------
def _kwinners_ref(x, boost, k):
    b = x * boost
    thr = jax.lax.top_k(b, k)[0][:, -1:]
    return jnp.where(b >= thr, x, 0.0)


def _reference(x_nchw, params, output_dims, k_inf):
    n = x_nchw.shape[0]
    x = x_nchw.reshape(n, -1).astype(jnp.bfloat16)
    (w1f, b1f, bf1, w2f, b2f, bf2, whf, bhf) = _prepare_params(params)
    h = jnp.dot(x, w1f, preferred_element_type=jnp.float32) + b1f
    h = _kwinners_ref(h, bf1, k_inf[0])
    h = jnp.dot(h.astype(jnp.bfloat16), w2f, preferred_element_type=jnp.float32) + b2f
    h = _kwinners_ref(h, bf2, k_inf[1])
    out = jnp.dot(h.astype(jnp.bfloat16), whf, preferred_element_type=jnp.float32) + bhf
    out = out.astype(jnp.bfloat16).astype(jnp.float32)     # match kernel store dtype
    outs, off = [], 0
    for d in output_dims:
        outs.append(out[:, off:off + d])
        off += d
    return outs


# ----------------------------------------------------------------------------
if __name__ == "__main__":
    # Module hyper-parameters (small, consistent with the PyTorch module)
    batch, chans, hw = 2, 4, 16
    input_size = chans * hw * hw                    # 1024 after Flatten
    hidden_sizes = (32, 32)
    num_heads = 2
    output_dims = (16, 8)
    linear_activity_percent_on = (0.1, 0.1)
    linear_weight_percent_on = (0.4, 0.4)
    boost_strength = 1.67
    k_inference_factor = 1.5

    # k / k_inference per hidden layer (eval mode uses k_inference)
    k_inf = []
    for hsz, pct in zip(hidden_sizes, linear_activity_percent_on):
        k = int(round(hsz * pct))
        k_inf.append(max(1, int(round(k * k_inference_factor))))
    k_inf = tuple(k_inf)

    key = jax.random.PRNGKey(0)
    (kx, kw1, km1, kbn1, kw2, km2, kbn2, kh1, kh2) = jax.random.split(key, 9)

    # Input (NCHW, like the PyTorch module's (N, *, input_dim) with * = C,H,W)
    x = jax.random.normal(kx, (batch, chans, hw, hw), dtype=jnp.float32)

    # Hidden layer 1: sparse linear + batchnorm
    w1, b1 = _linear_params(kw1, input_size, hidden_sizes[0])
    w1 = w1 * _sparse_mask(km1, input_size, hidden_sizes[0], linear_weight_percent_on[0])
    s1, t1 = _bn_scale_shift(kbn1, hidden_sizes[0])
    bf1 = _boost_factors(hidden_sizes[0], k_inf[0], boost_strength)

    # Hidden layer 2: sparse linear + batchnorm
    w2, b2 = _linear_params(kw2, hidden_sizes[0], hidden_sizes[1])
    w2 = w2 * _sparse_mask(km2, hidden_sizes[0], hidden_sizes[1], linear_weight_percent_on[1])
    s2, t2 = _bn_scale_shift(kbn2, hidden_sizes[1])
    bf2 = _boost_factors(hidden_sizes[1], k_inf[1], boost_strength)

    # Output heads (dense linear, no nonlinearity) fused along the output axis
    wh_a, bh_a = _linear_params(kh1, hidden_sizes[1], output_dims[0])
    wh_b, bh_b = _linear_params(kh2, hidden_sizes[1], output_dims[1])
    wh = jnp.concatenate([wh_a, wh_b], axis=1)
    bh = jnp.concatenate([bh_a, bh_b], axis=1)

    params = (w1, b1, s1, t1, bf1, w2, b2, s2, t2, bf2, wh, bh)

    # Run Pallas kernel
    outs = multiheaded_sparse_mlp(x, params, output_dims, k_inf)
    outs = [jax.block_until_ready(o) for o in outs]

    # Check against pure-JAX reference (same folded bf16 params, f32 accumulate)
    refs = _reference(x, params, output_dims, k_inf)
    for o, r, d in zip(outs, refs, output_dims):
        assert o.shape == (batch, d), (o.shape, d)
        assert bool(jnp.allclose(o, r, atol=2e-2, rtol=2e-2)), "mismatch vs reference"

    print("KERNEL_OK")
</pallas_src>

<mosaic_0001>
module attributes {stable_mosaic.version = 11 : i64} {
  func.func @_mhs_mlp_kernel(%arg0: i32, %arg1: memref<2x1024xf32, #tpu.memory_space<vmem>>, %arg2: memref<1024x32xbf16, #tpu.memory_space<vmem>>, %arg3: memref<1x32xf32, #tpu.memory_space<vmem>>, %arg4: memref<1x32xf32, #tpu.memory_space<vmem>>, %arg5: memref<32x32xbf16, #tpu.memory_space<vmem>>, %arg6: memref<1x32xf32, #tpu.memory_space<vmem>>, %arg7: memref<1x32xf32, #tpu.memory_space<vmem>>, %arg8: memref<32x128xbf16, #tpu.memory_space<vmem>>, %arg9: memref<1x128xf32, #tpu.memory_space<vmem>>, %arg10: memref<2x128xbf16, #tpu.memory_space<vmem>>) attributes {dimension_semantics = [#tpu.dimension_semantics<parallel>], iteration_bounds = array<i64: 1>, scalar_prefetch = 0 : i64, scratch_operands = 0 : i64, tpu.core_type = #tpu.core_type<tc>, window_params = [{transform_indices = @transform_0, window_bounds = array<i64: 2, 1024>}, {pipeline_mode = #tpu.pipeline_mode<synchronous>, transform_indices = @transform_1, window_bounds = array<i64: 1024, 32>}, {pipeline_mode = #tpu.pipeline_mode<synchronous>, transform_indices = @transform_2, window_bounds = array<i64: 1, 32>}, {pipeline_mode = #tpu.pipeline_mode<synchronous>, transform_indices = @transform_3, window_bounds = array<i64: 1, 32>}, {pipeline_mode = #tpu.pipeline_mode<synchronous>, transform_indices = @transform_4, window_bounds = array<i64: 32, 32>}, {pipeline_mode = #tpu.pipeline_mode<synchronous>, transform_indices = @transform_5, window_bounds = array<i64: 1, 32>}, {pipeline_mode = #tpu.pipeline_mode<synchronous>, transform_indices = @transform_6, window_bounds = array<i64: 1, 32>}, {pipeline_mode = #tpu.pipeline_mode<synchronous>, transform_indices = @transform_7, window_bounds = array<i64: 32, 128>}, {pipeline_mode = #tpu.pipeline_mode<synchronous>, transform_indices = @transform_8, window_bounds = array<i64: 1, 128>}, {transform_indices = @transform_9, window_bounds = array<i64: 2, 128>}]} {
    %c0 = arith.constant 0 : index
    %c0_0 = arith.constant 0 : index
    %0 = vector.load %arg2[%c0, %c0_0] : memref<1024x32xbf16, #tpu.memory_space<vmem>>, vector<1024x32xbf16>
    %c0_1 = arith.constant 0 : index
    %c0_2 = arith.constant 0 : index
    %1 = vector.load %arg5[%c0_1, %c0_2] : memref<32x32xbf16, #tpu.memory_space<vmem>>, vector<32x32xbf16>
    %c0_3 = arith.constant 0 : index
    %c0_4 = arith.constant 0 : index
    %2 = vector.load %arg8[%c0_3, %c0_4] : memref<32x128xbf16, #tpu.memory_space<vmem>>, vector<32x128xbf16>
    %c0_5 = arith.constant 0 : index
    %c0_6 = arith.constant 0 : index
    %3 = vector.load %arg3[%c0_5, %c0_6] : memref<1x32xf32, #tpu.memory_space<vmem>>, vector<1x32xf32>
    %4 = vector.shape_cast %3 : vector<1x32xf32> to vector<1x32xf32>
    %5 = vector.broadcast %4 : vector<1x32xf32> to vector<2x32xf32>
    %c0_7 = arith.constant 0 : index
    %c0_8 = arith.constant 0 : index
    %6 = vector.load %arg4[%c0_7, %c0_8] : memref<1x32xf32, #tpu.memory_space<vmem>>, vector<1x32xf32>
    %7 = vector.shape_cast %6 : vector<1x32xf32> to vector<1x32xf32>
    %8 = vector.broadcast %7 : vector<1x32xf32> to vector<2x32xf32>
    %c0_9 = arith.constant 0 : index
    %c0_10 = arith.constant 0 : index
    %9 = vector.load %arg6[%c0_9, %c0_10] : memref<1x32xf32, #tpu.memory_space<vmem>>, vector<1x32xf32>
    %10 = vector.shape_cast %9 : vector<1x32xf32> to vector<1x32xf32>
    %11 = vector.broadcast %10 : vector<1x32xf32> to vector<2x32xf32>
    %c0_11 = arith.constant 0 : index
    %c0_12 = arith.constant 0 : index
    %12 = vector.load %arg7[%c0_11, %c0_12] : memref<1x32xf32, #tpu.memory_space<vmem>>, vector<1x32xf32>
    %13 = vector.shape_cast %12 : vector<1x32xf32> to vector<1x32xf32>
    %14 = vector.broadcast %13 : vector<1x32xf32> to vector<2x32xf32>
    %c0_13 = arith.constant 0 : index
    %c0_14 = arith.constant 0 : index
    %15 = vector.load %arg9[%c0_13, %c0_14] : memref<1x128xf32, #tpu.memory_space<vmem>>, vector<1x128xf32>
    %16 = vector.shape_cast %15 : vector<1x128xf32> to vector<1x128xf32>
    %17 = vector.broadcast %16 : vector<1x128xf32> to vector<2x128xf32>
    %c0_15 = arith.constant 0 : index
    %c0_16 = arith.constant 0 : index
    %18 = vector.load %arg1[%c0_15, %c0_16] : memref<2x1024xf32, #tpu.memory_space<vmem>>, vector<2x1024xf32>
    %19 = arith.truncf %18 : vector<2x1024xf32> to vector<2x1024xbf16>
    %cst = arith.constant dense<0.000000e+00> : vector<2x32xf32>
    %20 = tpu.matmul %19, %0, %cst {dimension_numbers = #tpu.dot_dimension_numbers<[1], [0], [0], [1], [0, 0, 1, 1], [], []>} : vector<2x1024xbf16>, vector<1024x32xbf16>, vector<2x32xf32> -> vector<2x32xf32>
    %21 = arith.addf %20, %5 : vector<2x32xf32>
    %22 = arith.mulf %21, %8 : vector<2x32xf32>
    %cst_17 = arith.constant dense<0xFF800000> : vector<2xf32>
    %23 = vector.multi_reduction <maximumf>, %22, %cst_17 [1] : vector<2x32xf32> to vector<2xf32>
    %24 = vector.shape_cast %23 : vector<2xf32> to vector<2x1xf32>
    %25 = vector.broadcast %24 : vector<2x1xf32> to vector<2x32xf32>
    %26 = arith.cmpf oge, %22, %25 : vector<2x32xf32>
    %cst_18 = arith.constant 0xFF800000 : f32
    %27 = vector.broadcast %cst_18 : f32 to vector<2x32xf32>
    %28 = arith.select %26, %27, %22 : vector<2x32xi1>, vector<2x32xf32>
    %cst_19 = arith.constant dense<0xFF800000> : vector<2xf32>
    %29 = vector.multi_reduction <maximumf>, %28, %cst_19 [1] : vector<2x32xf32> to vector<2xf32>
    %30 = vector.shape_cast %29 : vector<2xf32> to vector<2x1xf32>
    %31 = vector.broadcast %30 : vector<2x1xf32> to vector<2x32xf32>
    %32 = arith.cmpf ogt, %22, %31 : vector<2x32xf32>
    %33 = arith.extui %32 : vector<2x32xi1> to vector<2x32xi32>
    %34 = arith.sitofp %33 : vector<2x32xi32> to vector<2x32xf32>
    %cst_20 = arith.constant dense<0.000000e+00> : vector<2xf32>
    %35 = vector.multi_reduction <add>, %34, %cst_20 [1] : vector<2x32xf32> to vector<2xf32>
    %36 = vector.shape_cast %35 : vector<2xf32> to vector<2x1xf32>
    %cst_21 = arith.constant 4.000000e+00 : f32
    %37 = vector.broadcast %cst_21 : f32 to vector<2x1xf32>
    %38 = arith.cmpf olt, %36, %37 : vector<2x1xf32>
    %39 = arith.select %38, %30, %24 : vector<2x1xi1>, vector<2x1xf32>
    %40 = vector.broadcast %30 : vector<2x1xf32> to vector<2x32xf32>
    %41 = arith.cmpf oge, %28, %40 : vector<2x32xf32>
    %cst_22 = arith.constant 0xFF800000 : f32
    %42 = vector.broadcast %cst_22 : f32 to vector<2x32xf32>
    %43 = arith.select %41, %42, %28 : vector<2x32xi1>, vector<2x32xf32>
    %cst_23 = arith.constant dense<0xFF800000> : vector<2xf32>
    %44 = vector.multi_reduction <maximumf>, %43, %cst_23 [1] : vector<2x32xf32> to vector<2xf32>
    %45 = vector.shape_cast %44 : vector<2xf32> to vector<2x1xf32>
    %46 = vector.broadcast %45 : vector<2x1xf32> to vector<2x32xf32>
    %47 = arith.cmpf ogt, %22, %46 : vector<2x32xf32>
    %48 = arith.extui %47 : vector<2x32xi1> to vector<2x32xi32>
    %49 = arith.sitofp %48 : vector<2x32xi32> to vector<2x32xf32>
    %cst_24 = arith.constant dense<0.000000e+00> : vector<2xf32>
    %50 = vector.multi_reduction <add>, %49, %cst_24 [1] : vector<2x32xf32> to vector<2xf32>
    %51 = vector.shape_cast %50 : vector<2xf32> to vector<2x1xf32>
    %cst_25 = arith.constant 4.000000e+00 : f32
    %52 = vector.broadcast %cst_25 : f32 to vector<2x1xf32>
    %53 = arith.cmpf olt, %51, %52 : vector<2x1xf32>
    %54 = arith.select %53, %45, %39 : vector<2x1xi1>, vector<2x1xf32>
    %55 = vector.broadcast %45 : vector<2x1xf32> to vector<2x32xf32>
    %56 = arith.cmpf oge, %43, %55 : vector<2x32xf32>
    %cst_26 = arith.constant 0xFF800000 : f32
    %57 = vector.broadcast %cst_26 : f32 to vector<2x32xf32>
    %58 = arith.select %56, %57, %43 : vector<2x32xi1>, vector<2x32xf32>
    %cst_27 = arith.constant dense<0xFF800000> : vector<2xf32>
    %59 = vector.multi_reduction <maximumf>, %58, %cst_27 [1] : vector<2x32xf32> to vector<2xf32>
    %60 = vector.shape_cast %59 : vector<2xf32> to vector<2x1xf32>
    %61 = vector.broadcast %60 : vector<2x1xf32> to vector<2x32xf32>
    %62 = arith.cmpf ogt, %22, %61 : vector<2x32xf32>
    %63 = arith.extui %62 : vector<2x32xi1> to vector<2x32xi32>
    %64 = arith.sitofp %63 : vector<2x32xi32> to vector<2x32xf32>
    %cst_28 = arith.constant dense<0.000000e+00> : vector<2xf32>
    %65 = vector.multi_reduction <add>, %64, %cst_28 [1] : vector<2x32xf32> to vector<2xf32>
    %66 = vector.shape_cast %65 : vector<2xf32> to vector<2x1xf32>
    %cst_29 = arith.constant 4.000000e+00 : f32
    %67 = vector.broadcast %cst_29 : f32 to vector<2x1xf32>
    %68 = arith.cmpf olt, %66, %67 : vector<2x1xf32>
    %69 = arith.select %68, %60, %54 : vector<2x1xi1>, vector<2x1xf32>
    %70 = vector.broadcast %69 : vector<2x1xf32> to vector<2x32xf32>
    %71 = arith.cmpf oge, %22, %70 : vector<2x32xf32>
    %cst_30 = arith.constant 0.000000e+00 : f32
    %72 = vector.broadcast %cst_30 : f32 to vector<2x32xf32>
    %73 = arith.select %71, %21, %72 : vector<2x32xi1>, vector<2x32xf32>
    %74 = arith.truncf %73 : vector<2x32xf32> to vector<2x32xbf16>
    %cst_31 = arith.constant dense<0.000000e+00> : vector<2x32xf32>
    %75 = tpu.matmul %74, %1, %cst_31 {dimension_numbers = #tpu.dot_dimension_numbers<[1], [0], [0], [1], [0, 0, 1, 1], [], []>} : vector<2x32xbf16>, vector<32x32xbf16>, vector<2x32xf32> -> vector<2x32xf32>
    %76 = arith.addf %75, %11 : vector<2x32xf32>
    %77 = arith.mulf %76, %14 : vector<2x32xf32>
    %cst_32 = arith.constant dense<0xFF800000> : vector<2xf32>
    %78 = vector.multi_reduction <maximumf>, %77, %cst_32 [1] : vector<2x32xf32> to vector<2xf32>
    %79 = vector.shape_cast %78 : vector<2xf32> to vector<2x1xf32>
    %80 = vector.broadcast %79 : vector<2x1xf32> to vector<2x32xf32>
    %81 = arith.cmpf oge, %77, %80 : vector<2x32xf32>
    %cst_33 = arith.constant 0xFF800000 : f32
    %82 = vector.broadcast %cst_33 : f32 to vector<2x32xf32>
    %83 = arith.select %81, %82, %77 : vector<2x32xi1>, vector<2x32xf32>
    %cst_34 = arith.constant dense<0xFF800000> : vector<2xf32>
    %84 = vector.multi_reduction <maximumf>, %83, %cst_34 [1] : vector<2x32xf32> to vector<2xf32>
    %85 = vector.shape_cast %84 : vector<2xf32> to vector<2x1xf32>
    %86 = vector.broadcast %85 : vector<2x1xf32> to vector<2x32xf32>
    %87 = arith.cmpf ogt, %77, %86 : vector<2x32xf32>
    %88 = arith.extui %87 : vector<2x32xi1> to vector<2x32xi32>
    %89 = arith.sitofp %88 : vector<2x32xi32> to vector<2x32xf32>
    %cst_35 = arith.constant dense<0.000000e+00> : vector<2xf32>
    %90 = vector.multi_reduction <add>, %89, %cst_35 [1] : vector<2x32xf32> to vector<2xf32>
    %91 = vector.shape_cast %90 : vector<2xf32> to vector<2x1xf32>
    %cst_36 = arith.constant 4.000000e+00 : f32
    %92 = vector.broadcast %cst_36 : f32 to vector<2x1xf32>
    %93 = arith.cmpf olt, %91, %92 : vector<2x1xf32>
    %94 = arith.select %93, %85, %79 : vector<2x1xi1>, vector<2x1xf32>
    %95 = vector.broadcast %85 : vector<2x1xf32> to vector<2x32xf32>
    %96 = arith.cmpf oge, %83, %95 : vector<2x32xf32>
    %cst_37 = arith.constant 0xFF800000 : f32
    %97 = vector.broadcast %cst_37 : f32 to vector<2x32xf32>
    %98 = arith.select %96, %97, %83 : vector<2x32xi1>, vector<2x32xf32>
    %cst_38 = arith.constant dense<0xFF800000> : vector<2xf32>
    %99 = vector.multi_reduction <maximumf>, %98, %cst_38 [1] : vector<2x32xf32> to vector<2xf32>
    %100 = vector.shape_cast %99 : vector<2xf32> to vector<2x1xf32>
    %101 = vector.broadcast %100 : vector<2x1xf32> to vector<2x32xf32>
    %102 = arith.cmpf ogt, %77, %101 : vector<2x32xf32>
    %103 = arith.extui %102 : vector<2x32xi1> to vector<2x32xi32>
    %104 = arith.sitofp %103 : vector<2x32xi32> to vector<2x32xf32>
    %cst_39 = arith.constant dense<0.000000e+00> : vector<2xf32>
    %105 = vector.multi_reduction <add>, %104, %cst_39 [1] : vector<2x32xf32> to vector<2xf32>
    %106 = vector.shape_cast %105 : vector<2xf32> to vector<2x1xf32>
    %cst_40 = arith.constant 4.000000e+00 : f32
    %107 = vector.broadcast %cst_40 : f32 to vector<2x1xf32>
    %108 = arith.cmpf olt, %106, %107 : vector<2x1xf32>
    %109 = arith.select %108, %100, %94 : vector<2x1xi1>, vector<2x1xf32>
    %110 = vector.broadcast %100 : vector<2x1xf32> to vector<2x32xf32>
    %111 = arith.cmpf oge, %98, %110 : vector<2x32xf32>
    %cst_41 = arith.constant 0xFF800000 : f32
    %112 = vector.broadcast %cst_41 : f32 to vector<2x32xf32>
    %113 = arith.select %111, %112, %98 : vector<2x32xi1>, vector<2x32xf32>
    %cst_42 = arith.constant dense<0xFF800000> : vector<2xf32>
    %114 = vector.multi_reduction <maximumf>, %113, %cst_42 [1] : vector<2x32xf32> to vector<2xf32>
    %115 = vector.shape_cast %114 : vector<2xf32> to vector<2x1xf32>
    %116 = vector.broadcast %115 : vector<2x1xf32> to vector<2x32xf32>
    %117 = arith.cmpf ogt, %77, %116 : vector<2x32xf32>
    %118 = arith.extui %117 : vector<2x32xi1> to vector<2x32xi32>
    %119 = arith.sitofp %118 : vector<2x32xi32> to vector<2x32xf32>
    %cst_43 = arith.constant dense<0.000000e+00> : vector<2xf32>
    %120 = vector.multi_reduction <add>, %119, %cst_43 [1] : vector<2x32xf32> to vector<2xf32>
    %121 = vector.shape_cast %120 : vector<2xf32> to vector<2x1xf32>
    %cst_44 = arith.constant 4.000000e+00 : f32
    %122 = vector.broadcast %cst_44 : f32 to vector<2x1xf32>
    %123 = arith.cmpf olt, %121, %122 : vector<2x1xf32>
    %124 = arith.select %123, %115, %109 : vector<2x1xi1>, vector<2x1xf32>
    %125 = vector.broadcast %124 : vector<2x1xf32> to vector<2x32xf32>
    %126 = arith.cmpf oge, %77, %125 : vector<2x32xf32>
    %cst_45 = arith.constant 0.000000e+00 : f32
    %127 = vector.broadcast %cst_45 : f32 to vector<2x32xf32>
    %128 = arith.select %126, %76, %127 : vector<2x32xi1>, vector<2x32xf32>
    %129 = arith.truncf %128 : vector<2x32xf32> to vector<2x32xbf16>
    %cst_46 = arith.constant dense<0.000000e+00> : vector<2x128xf32>
    %130 = tpu.matmul %129, %2, %cst_46 {dimension_numbers = #tpu.dot_dimension_numbers<[1], [0], [0], [1], [0, 0, 1, 1], [], []>} : vector<2x32xbf16>, vector<32x128xbf16>, vector<2x128xf32> -> vector<2x128xf32>
    %131 = arith.addf %130, %17 : vector<2x128xf32>
    %132 = arith.truncf %131 : vector<2x128xf32> to vector<2x128xbf16>
    %c0_47 = arith.constant 0 : index
    %c0_48 = arith.constant 0 : index
    %133 = vector.load %arg10[%c0_47, %c0_48] : memref<2x128xbf16, #tpu.memory_space<vmem>>, vector<2x128xbf16>
    tpu.vector_store %arg10[%c0_47, %c0_48], %132 {strides = array<i32>} : memref<2x128xbf16, #tpu.memory_space<vmem>>, vector<2x128xbf16>,
    return
  }
  func.func @transform_0(%arg0: i32) -> (i32, i32) {
    %c0_i32 = arith.constant 0 : i32
    %c0_i32_0 = arith.constant 0 : i32
    return %arg0, %c0_i32 : i32, i32
  }
  func.func @transform_1(%arg0: i32) -> (i32, i32) {
    %c0_i32 = arith.constant 0 : i32
    %c0_i32_0 = arith.constant 0 : i32
    %c0_i32_1 = arith.constant 0 : i32
    return %c0_i32, %c0_i32_0 : i32, i32
  }
  func.func @transform_2(%arg0: i32) -> (i32, i32) {
    %c0_i32 = arith.constant 0 : i32
    %c0_i32_0 = arith.constant 0 : i32
    %c0_i32_1 = arith.constant 0 : i32
    return %c0_i32, %c0_i32_0 : i32, i32
  }
  func.func @transform_3(%arg0: i32) -> (i32, i32) {
    %c0_i32 = arith.constant 0 : i32
    %c0_i32_0 = arith.constant 0 : i32
    %c0_i32_1 = arith.constant 0 : i32
    return %c0_i32, %c0_i32_0 : i32, i32
  }
  func.func @transform_4(%arg0: i32) -> (i32, i32) {
    %c0_i32 = arith.constant 0 : i32
    %c0_i32_0 = arith.constant 0 : i32
    %c0_i32_1 = arith.constant 0 : i32
    return %c0_i32, %c0_i32_0 : i32, i32
  }
  func.func @transform_5(%arg0: i32) -> (i32, i32) {
    %c0_i32 = arith.constant 0 : i32
    %c0_i32_0 = arith.constant 0 : i32
    %c0_i32_1 = arith.constant 0 : i32
    return %c0_i32, %c0_i32_0 : i32, i32
  }
  func.func @transform_6(%arg0: i32) -> (i32, i32) {
    %c0_i32 = arith.constant 0 : i32
    %c0_i32_0 = arith.constant 0 : i32
    %c0_i32_1 = arith.constant 0 : i32
    return %c0_i32, %c0_i32_0 : i32, i32
  }
  func.func @transform_7(%arg0: i32) -> (i32, i32) {
    %c0_i32 = arith.constant 0 : i32
    %c0_i32_0 = arith.constant 0 : i32
    %c0_i32_1 = arith.constant 0 : i32
    return %c0_i32, %c0_i32_0 : i32, i32
  }
  func.func @transform_8(%arg0: i32) -> (i32, i32) {
    %c0_i32 = arith.constant 0 : i32
    %c0_i32_0 = arith.constant 0 : i32
    %c0_i32_1 = arith.constant 0 : i32
    return %c0_i32, %c0_i32_0 : i32, i32
  }
  func.func @transform_9(%arg0: i32) -> (i32, i32) {
    %c0_i32 = arith.constant 0 : i32
    %c0_i32_0 = arith.constant 0 : i32
    return %arg0, %c0_i32 : i32, i32
  }
}

</mosaic_0001>

<bundles_post_ra>
// kernel: tpu_custom_call.1
= control target key start
LH: loop header
LB: loop body
LE: loop exit
PB: predicated region body
PF: predicated region fallthrough
CT: control target
= control target key end

     0   :  { %v213_v28 = vlaneseq  ;;  %v1312_v36 = vmov 1983009808   ;;  %s1637_s0 = inlined_call_operand.vmem [shape: f32[2,1024], index: 0, kind: input, shape index: {}]   ;;  %s1638_s1 = inlined_call_operand.vmem [shape: bf16[1024,32], index: 1, kind: input, shape index: {}]   ;;  %s1639_s2 = inlined_call_operand.vmem [shape: f32[1,32], index: 2, kind: input, shape index: {}]   ;;  %s1640_s3 = inlined_call_operand.vmem [shape: f32[1,32], index: 3, kind: input, shape index: {}]   ;;  %s1641_s4 = inlined_call_operand.vmem [shape: bf16[32,32], index: 4, kind: input, shape index: {}]   ;;  %s1642_s5 = inlined_call_operand.vmem [shape: f32[1,32], index: 5, kind: input, shape index: {}]   ;;  %s1643_s6 = inlined_call_operand.vmem [shape: f32[1,32], index: 6, kind: input, shape index: {}]   ;;  %s1644_s7 = inlined_call_operand.vmem [shape: bf16[32,128], index: 7, kind: input, shape index: {}]   ;;  %s1645_s8 = inlined_call_operand.vmem [shape: f32[1,128], index: 8, kind: input, shape index: {}]   ;;  %s1646_s9 = inlined_call_operand.hbm [shape: bf16[2,128], index: 9, kind: output, shape index: {}]  }
   0x1   :  { %v1218_v0 = vld [vmem:[%s1638_s1 + $0x40] sm:$0xff]   ;;  %v1222_v4 = vld [vmem:[%s1638_s1 + $0x48] sm:$0xff]   ;;  %v1226_v8 = vld [vmem:[%s1638_s1 + $0x50] sm:$0xff]   ;;  %v211_v37 = vunpack.c.l.s4 %v1312_v36 }
   0x2   :  { %v1219_v1 = vld [vmem:[%s1638_s1 + $0xc0] sm:$0xff]   ;;  %1104 = vmatprep.subr.bf16.mxu0 %v1218_v0  ;;  %v1223_v5 = vld [vmem:[%s1638_s1 + $0xc8] sm:$0xff]   ;;  %v1227_v9 = vld [vmem:[%s1638_s1 + $0xd0] sm:$0xff]   ;;  %v214_v33 = vshrl.u32 %v213_v28, 7 }
   0x3   :  { %v1220_v2 = vld [vmem:[%s1638_s1] sm:$0xff]   ;;  %1126 = vmatprep.subr.bf16.mxu1 %v1219_v1  ;;  %v1224_v6 = vld [vmem:[%s1638_s1 + $0x8] sm:$0xff]   ;;  %v1228_v10 = vld [vmem:[%s1638_s1 + $0x10] sm:$0xff]   ;;  %v212_v39 = vunpack.c.0.s8 %v211_v37 }
   0x4   :  { %v1221_v3 = vld [vmem:[%s1638_s1 + $0x80] sm:$0xff]   ;;  %1105 = vmatpush3.bf16.msra.mxu0 %v1220_v2  ;;  %v1225_v7 = vld [vmem:[%s1638_s1 + $0x88] sm:$0xff]   ;;  %v1229_v11 = vld [vmem:[%s1638_s1 + $0x90] sm:$0xff]  }
   0x5   :  { %1127 = vmatpush3.bf16.msra.mxu1 %v1221_v3  ;;  %1106 = vmatprep.subr.bf16.mxu0 %v1222_v4  ;;  %v1230_v12 = vld [vmem:[%s1638_s1 + $0x58] sm:$0xff]   ;;  %v1234_v16 = vld [vmem:[%s1638_s1 + $0x60] sm:$0xff]   ;;  %v1238_v20 = vld [vmem:[%s1638_s1 + $0x68] sm:$0xff]   ;;  %v1471_v41 = vsub.s32 %v212_v39, %v214_v33 }
   0x6   :  { %1128 = vmatprep.subr.bf16.mxu1 %v1223_v5  ;;  %v1231_v13 = vld [vmem:[%s1638_s1 + $0xd8] sm:$0xff]   ;;  %v1235_v17 = vld [vmem:[%s1638_s1 + $0xe0] sm:$0xff]   ;;  %v1239_v21 = vld [vmem:[%s1638_s1 + $0xe8] sm:$0xff]  }
   0x7   :  { %v1232_v14 = vld [vmem:[%s1638_s1 + $0x18] sm:$0xff]   ;;  %v1236_v18 = vld [vmem:[%s1638_s1 + $0x20] sm:$0xff]   ;;  %v1240_v22 = vld [vmem:[%s1638_s1 + $0x28] sm:$0xff]  }
   0x8   :  { %1107 = vmatpush3.bf16.msra.mxu0 %v1224_v6  ;;  %v1233_v15 = vld [vmem:[%s1638_s1 + $0x98] sm:$0xff]   ;;  %v1237_v19 = vld [vmem:[%s1638_s1 + $0xa0] sm:$0xff]   ;;  %v1241_v23 = vld [vmem:[%s1638_s1 + $0xa8] sm:$0xff]  }
   0x9   :  { %1129 = vmatpush3.bf16.msra.mxu1 %v1225_v7  ;;  %1108 = vmatprep.subr.bf16.mxu0 %v1226_v8  ;;  %v1242_v24 = vld [vmem:[%s1638_s1 + $0x70] sm:$0xff]   ;;  %v1246_v29 = vld [vmem:[%s1638_s1 + $0x78] sm:$0xff]   ;;  %v205_v34 = vld [vmem:[%s1637_s0] sm:$0xff] }
   0xa   :  { %1130 = vmatprep.subr.bf16.mxu1 %v1227_v9  ;;  %v1243_v25 = vld [vmem:[%s1638_s1 + $0xf0] sm:$0xff]   ;;  %v1247_v30 = vld [vmem:[%s1638_s1 + $0xf8] sm:$0xff]   ;;  %v1251_v35 = vld [vmem:[%s1638_s1 + $0x140] sm:$0xff]   ;;  %v209_v40 = vcombine.high %v205_v34, %v205_v34  ;;  %v216_v42 = vrot.slane %v205_v34, %v1471_v41 }
   0xb   :  { %v1244_v26 = vld [vmem:[%s1638_s1 + $0x30] sm:$0xff]   ;;  %v1248_v31 = vld [vmem:[%s1638_s1 + $0x38] sm:$0xff]   ;;  %v1252_v38 = vld [vmem:[%s1638_s1 + $0x1c0] sm:$0xff]  }
   0xc   :  { %1109 = vmatpush3.bf16.msra.mxu0 %v1228_v10  ;;  %v1245_v27 = vld [vmem:[%s1638_s1 + $0xb0] sm:$0xff]   ;;  %v1249_v32 = vld [vmem:[%s1638_s1 + $0xb8] sm:$0xff]   ;;  %v223_v43 = vrot.slane %v209_v40, %v1471_v41  ;;  %v224_v44 = vcombine.high %v216_v42, %v216_v42  ;;  %v1253_v46 = vld [vmem:[%s1638_s1 + $0x100] sm:$0xff]   ;;  %v251_v47 = vpack.c.bf16 %v216_v42, %v216_v42 }
   0xd   :  { %1131 = vmatpush3.bf16.msra.mxu1 %v1229_v11  ;;  %1110 = vmatprep.subr.bf16.mxu0 %v1230_v12  ;;  %v1254_v49 = vld [vmem:[%s1638_s1 + $0x180] sm:$0xff]   ;;  %v1255_v52 = vld [vmem:[%s1638_s1 + $0x148] sm:$0xff]   ;;  %v1259_v56 = vld [vmem:[%s1638_s1 + $0x150] sm:$0xff]  }
   0xe   :  { %1132 = vmatprep.subr.bf16.mxu1 %v1231_v13  ;;  %v225_v45 = vcombine.high %v223_v43, %v223_v43  ;;  %v253_v48 = vpack.c.bf16 %v223_v43, %v223_v43  ;;  %v252_v50 = vpack.c.bf16 %v224_v44, %v224_v44  ;;  %v1256_v53 = vld [vmem:[%s1638_s1 + $0x1c8] sm:$0xff]   ;;  %v1260_v57 = vld [vmem:[%s1638_s1 + $0x1d0] sm:$0xff]   ;;  %v1263_v60 = vld [vmem:[%s1638_s1 + $0x158] sm:$0xff]  }
   0xf   :  { %v1257_v54 = vld [vmem:[%s1638_s1 + $0x108] sm:$0xff]   ;;  %v1261_v58 = vld [vmem:[%s1638_s1 + $0x110] sm:$0xff]   ;;  %v1264_v61 = vld [vmem:[%s1638_s1 + $0x1d8] sm:$0xff]  }
  0x10   :  { %1111 = vmatpush3.bf16.msra.mxu0 %v1232_v14  ;;  %v254_v51 = vpack.c.bf16 %v225_v45, %v225_v45  ;;  %675 = vmatprep.mubr.bf16.mxu0 %v252_v50  ;;  %v1258_v55 = vld [vmem:[%s1638_s1 + $0x188] sm:$0xff]   ;;  %v1262_v59 = vld [vmem:[%s1638_s1 + $0x190] sm:$0xff]   ;;  %v1265_v62 = vld [vmem:[%s1638_s1 + $0x118] sm:$0xff]  }
  0x11   :  { %1133 = vmatpush3.bf16.msra.mxu1 %v1233_v15  ;;  %1112 = vmatprep.subr.bf16.mxu0 %v1234_v16  ;;  %v1266_v63 = vld [vmem:[%s1638_s1 + $0x198] sm:$0xff]   ;;  %v1267_v0 = vld [vmem:[%s1638_s1 + $0x160] sm:$0xff]   ;;  %v1271_v4 = vld [vmem:[%s1638_s1 + $0x168] sm:$0xff]  }
  0x12   :  { %1134 = vmatprep.subr.bf16.mxu1 %v1235_v17  ;;  %715 = vmatprep.mubr.bf16.mxu1 %v254_v51  ;;  %v1268_v1 = vld [vmem:[%s1638_s1 + $0x1e0] sm:$0xff]   ;;  %v1272_v5 = vld [vmem:[%s1638_s1 + $0x1e8] sm:$0xff]   ;;  %v1275_v8 = vld [vmem:[%s1638_s1 + $0x170] sm:$0xff]  }
  0x13   :  { %v1269_v2 = vld [vmem:[%s1638_s1 + $0x120] sm:$0xff]   ;;  %v1273_v6 = vld [vmem:[%s1638_s1 + $0x128] sm:$0xff]   ;;  %v1276_v9 = vld [vmem:[%s1638_s1 + $0x1f0] sm:$0xff]  }
  0x14   :  { %1113 = vmatpush3.bf16.msra.mxu0 %v1236_v18  ;;  %v1270_v3 = vld [vmem:[%s1638_s1 + $0x1a0] sm:$0xff]   ;;  %v1274_v7 = vld [vmem:[%s1638_s1 + $0x1a8] sm:$0xff]   ;;  %v1277_v11 = vld [vmem:[%s1638_s1 + $0x130] sm:$0xff]  }
  0x15   :  { %1135 = vmatpush3.bf16.msra.mxu1 %v1237_v19  ;;  %1114 = vmatprep.subr.bf16.mxu0 %v1238_v20  ;;  %v206_v10 = vld [vmem:[%s1637_s0 + $0x8] sm:$0xff]  ;;  %v1278_v14 = vld [vmem:[%s1638_s1 + $0x1b0] sm:$0xff]  }
  0x16   :  { %1136 = vmatprep.subr.bf16.mxu1 %v1239_v21  ;;  %v233_v12 = vrot.slane %v206_v10, %v1471_v41  ;;  %v226_v13 = vcombine.high %v206_v10, %v206_v10 }
  0x18   :  { %1115 = vmatpush3.bf16.msra.mxu0 %v1240_v22  ;;  %v241_v15 = vcombine.high %v233_v12, %v233_v12  ;;  %v240_v16 = vrot.slane %v226_v13, %v1471_v41 }
  0x19   :  { %1137 = vmatpush3.bf16.msra.mxu1 %v1241_v23  ;;  %1116 = vmatprep.subr.bf16.mxu0 %v1242_v24 }
  0x1a   :  { %1138 = vmatprep.subr.bf16.mxu1 %v1243_v25 }
  0x1c   :  { %1117 = vmatpush3.bf16.msra.mxu0 %v1244_v26 }
  0x1d   :  { %1139 = vmatpush3.bf16.msra.mxu1 %v1245_v27  ;;  %1118 = vmatprep.subr.bf16.mxu0 %v1246_v29 }
  0x1e   :  { %1140 = vmatprep.subr.bf16.mxu1 %v1247_v30 }
  0x20   :  { %1119 = vmatpush3.bf16.msra.mxu0 %v1248_v31 }
  0x21   :  { %1141 = vmatpush3.bf16.msra.mxu1 %v1249_v32  ;;  %1148 = vmatprep.subr.bf16.mxu0 %v1251_v35 }
  0x22   :  { %1170 = vmatprep.subr.bf16.mxu1 %v1252_v38 }
  0x23   :  { %676 = vmatmul.mubr.bf16.vlgmr.msra.gmra.mrb[0].mxu0 %v251_v47 }
  0x24   :  { %716 = vmatmul.mubr.bf16.vlgmr.msra.gmra.mrb[0].mxu1 %v253_v48  ;;  %1149 = vmatpush3.bf16.msra.mxu0 %v1253_v46 }
  0x25   :  { %1171 = vmatpush3.bf16.msra.mxu1 %v1254_v49  ;;  %1150 = vmatprep.subr.bf16.mxu0 %v1255_v52 }
  0x26   :  { %1172 = vmatprep.subr.bf16.mxu1 %v1256_v53 }
  0x28   :  { %1151 = vmatpush3.bf16.msra.mxu0 %v1257_v54 }
  0x29   :  { %1173 = vmatpush3.bf16.msra.mxu1 %v1258_v55  ;;  %1152 = vmatprep.subr.bf16.mxu0 %v1259_v56 }
  0x2a   :  { %1174 = vmatprep.subr.bf16.mxu1 %v1260_v57 }
  0x2c   :  { %1153 = vmatpush3.bf16.msra.mxu0 %v1261_v58 }
  0x2d   :  { %1175 = vmatpush3.bf16.msra.mxu1 %v1262_v59  ;;  %1154 = vmatprep.subr.bf16.mxu0 %v1263_v60 }
  0x2e   :  { %1176 = vmatprep.subr.bf16.mxu1 %v1264_v61 }
  0x30   :  { %1155 = vmatpush3.bf16.msra.mxu0 %v1265_v62 }
  0x31   :  { %1177 = vmatpush3.bf16.msra.mxu1 %v1266_v63  ;;  %1156 = vmatprep.subr.bf16.mxu0 %v1267_v0 }
  0x32   :  { %1178 = vmatprep.subr.bf16.mxu1 %v1268_v1 }
  0x34   :  { %1157 = vmatpush3.bf16.msra.mxu0 %v1269_v2 }
  0x35   :  { %1179 = vmatpush3.bf16.msra.mxu1 %v1270_v3  ;;  %1158 = vmatprep.subr.bf16.mxu0 %v1271_v4 }
  0x36   :  { %1180 = vmatprep.subr.bf16.mxu1 %v1272_v5 }
  0x38   :  { %1159 = vmatpush3.bf16.msra.mxu0 %v1273_v6 }
  0x39   :  { %1181 = vmatpush3.bf16.msra.mxu1 %v1274_v7 }
  0x3a   :  { %14 = vsyncpa [#allocation3], 0  ;;  %1160 = vmatprep.subr.bf16.mxu0 %v1275_v8  ;;  %1182 = vmatprep.subr.bf16.mxu1 %v1276_v9  ;;  %v1279_v17 = vld [vmem:[%s1638_s1 + $0x178] sm:$0xff]   ;;  %v256_v19 = vpack.c.bf16 %v241_v15, %v241_v15  ;;  %v242_v20 = vcombine.high %v240_v16, %v240_v16  ;;  %v255_v24 = vpack.c.bf16 %v233_v12, %v233_v12  ;;  %v1023_v28 = vld [vmem:[%s1639_s2] ss:$0 sm:$0xff]  ;;  %vm804_vm0 = vcmask 254976  }
  0x3b   :  { %v1280_v18 = vld [vmem:[%s1638_s1 + $0x1f8] sm:$0xff]   ;;  %v257_v25 = vpack.c.bf16 %v240_v16, %v240_v16  ;;  %v1024_v50 = vld [vmem:[%s1640_s3] ss:$0 sm:$0xff]  ;;  %v1313_v57 = vmov 0.0   ;;  %v1285_v8 = vld [vmem:[%s1641_s4 + $0x8] sm:$0xff]   ;;  %vm1314_vm7 = vmmov 0  }
  0x3c   :  { %1161 = vmatpush3.bf16.msra.mxu0 %v1277_v11  ;;  %v1281_v21 = vld [vmem:[%s1638_s1 + $0x138] sm:$0xff]   ;;  %v258_v23 = vpack.c.bf16 %v242_v20, %v242_v20  ;;  %755 = vmatprep.mubr.bf16.mxu0 %v256_v19  ;;  %v1284_v4 = vld [vmem:[%s1641_s4] sm:$0xff]   ;;  %vm862_vm12 = vcmask 261120  }
  0x3d   :  { %1183 = vmatpush3.bf16.msra.mxu1 %v1278_v14  ;;  %v1282_v22 = vld [vmem:[%s1638_s1 + $0x1b8] sm:$0xff]   ;;  %1162 = vmatprep.subr.bf16.mxu0 %v1279_v17  ;;  %v1025_v17 = vld [vmem:[%s1642_s5] ss:$0 sm:$0xff] }
  0x3e   :  { %1184 = vmatprep.subr.bf16.mxu1 %v1280_v18  ;;  %795 = vmatprep.mubr.bf16.mxu1 %v258_v23  ;;  %v1026_v18 = vld [vmem:[%s1643_s6] ss:$0 sm:$0xff] }
  0x40   :  { %1163 = vmatpush3.bf16.msra.mxu0 %v1281_v21 }
  0x41   :  { %1185 = vmatpush3.bf16.msra.mxu1 %v1282_v22  ;;  %1198 = vmatprep.subr.bf16.mxu0 %v1313_v57 }
  0x42   :  { %1206 = vmatprep.subr.bf16.mxu1 %v1313_v57 }
  0x43   :  { %756 = vmatmul.mubr.bf16.vlgmr.msra.gmra.mrb[4].mxu0 %v255_v24 }
  0x44   :  { %796 = vmatmul.mubr.bf16.vlgmr.msra.gmra.mrb[4].mxu1 %v257_v25  ;;  %1199 = vmatpush3.bf16.msra.mxu0 %v1284_v4 }
  0x45   :  { %1200 = vmatprep.subr.bf16.mxu0 %v1313_v57  ;;  %1202 = vmatprep.mubr.msk.bf16.mxu0 %vm1314_vm7, %v1313_v57 }
  0x46   :  { %1210 = vmatprep.mubr.msk.bf16.mxu1 %vm1314_vm7, %v1313_v57 }
  0x48   :  { %1201 = vmatpush3.bf16.msra.mxu0 %v1285_v8 }
  0xf6   :  { %v1120_v26 = vpop.f32.mrb[0].mxu0 }
  0xf7   :  { %v1142_v27 = vpop.f32.mrb[0].mxu1  ;;  %v1121_v29 = vpop.f32.mrb[1].mxu0 }
  0xf8   :  { %v1143_v30 = vpop.f32.mrb[1].mxu1  ;;  %v1122_v31 = vadd.f32 %v1121_v29, %v1120_v26  ;;  %v1123_v33 = vpop.f32.mrb[2].mxu0 }
  0xf9   :  { %v1144_v32 = vadd.f32 %v1143_v30, %v1142_v27  ;;  %v1145_v34 = vpop.f32.mrb[2].mxu1  ;;  %v1124_v35 = vpop.f32.mrb[3].mxu0 }
  0xfa   :  { %v1146_v36 = vpop.f32.mrb[3].mxu1  ;;  %v678_v37 = vadd.f32 %v1122_v31, %v1023_v28 }
  0xfc   :  { %v718_v38 = vadd.f32 %v1144_v32, %v678_v37 }
 0x116   :  { %v1164_v39 = vpop.f32.mrb[4].mxu0 }
 0x117   :  { %v1186_v40 = vpop.f32.mrb[4].mxu1  ;;  %v1165_v41 = vpop.f32.mrb[5].mxu0 }
 0x118   :  { %v1187_v42 = vpop.f32.mrb[5].mxu1  ;;  %v1166_v43 = vadd.f32 %v1165_v41, %v1164_v39  ;;  %v1167_v45 = vpop.f32.mrb[6].mxu0  ;;  %v1286_v39 = vld [vmem:[%s1644_s7] sm:$0xff]  }
 0x119   :  { %v1188_v44 = vadd.f32 %v1187_v42, %v1186_v40  ;;  %v1189_v46 = vpop.f32.mrb[6].mxu1  ;;  %v1168_v47 = vpop.f32.mrb[7].mxu0  ;;  %1207 = vmatpush3.bf16.msra.mxu1 %v1286_v39 }
 0x11a   :  { %v1190_v48 = vpop.f32.mrb[7].mxu1  ;;  %v758_v49 = vadd.f32 %v1166_v43, %v718_v38  ;;  %1208 = vmatprep.subr.bf16.mxu1 %v1313_v57  ;;  %v1287_v43 = vld [vmem:[%s1644_s7 + $0x8] sm:$0xff]   ;;  %s1315_s7 = smov [#allocation2]  }
 0x11b   :  { %s1015_s26 = sshll.u32 %s1315_s7, 4  ;;  %s1016_s26 = int_to_ptr.vmem [resolvable:$true] %s1015_s26 }
 0x11c   :  { %v798_v51 = vadd.f32 %v1188_v44, %v758_v49  ;;  %s1288_s27 = scalar_lea.vmem %s1016_s26, 16  ;;  %s1292_s0 = scalar_lea.vmem %s1016_s26, 32 }
 0x11d   :  { %1209 = vmatpush3.bf16.msra.mxu1 %v1287_v43  ;;  %p1289_p0 = scmp.ne.s32.totalorder %s1016_s26, %s1288_s27  ;;  %p1293_p1 = scmp.lt.s32.totalorder %s1016_s26, %s1016_s26 }
 0x11e   :  { %v803_v52 = vmul.f32 %v1024_v50, %v798_v51  ;;  %p1294_p2 = scmp.lt.s32.totalorder %s1292_s0, %s1288_s27 }
 0x120   :  { %v805_v53 = vsel %vm804_vm0, %v803_v52, -inf  ;;  %p1295_p3 = por %p1294_p2, %p1293_p1 }
 0x121   :  { %806 = vmax.xlane.f32.xlu0 %v805_v53 }
 0x122   :  { %p1296_p4 = pnand %p1295_p3, %p1289_p0 }
 0x1ae   :  { %v807_v54 = vpop.xlane.xlu0 %806 }
 0x1af   :  { %vm808_vm1 = vcmp.ge.f32.partialorder %v803_v52, %v807_v54 }
 0x1b0   :  { %v809_v55 = vsel %vm808_vm1, -inf, %v803_v52 }
 0x1b1   :  { %v810_v56 = vsel %vm804_vm0, %v809_v55, -inf }
 0x1b2   :  { %811 = vmax.xlane.f32.xlu0 %v810_v56 }
 0x23f   :  { %v812_v58 = vpop.xlane.xlu0 %811 }
 0x240   :  { %vm821_vm2 = vcmp.ge.f32.partialorder %v809_v55, %v812_v58  ;;  %vm813_vm3 = vcmp.gt.f32.partialorder %v803_v52, %v812_v58 }
 0x241   :  { %v822_v59 = vsel %vm821_vm2, -inf, %v809_v55  ;;  %v1092_v60 = vsel %vm813_vm3, 1.0, %v1313_v57 }
 0x242   :  { %v823_v61 = vsel %vm804_vm0, %v822_v59, -inf  ;;  %v816_v62 = vsel %vm804_vm0, %v1092_v60, 0.0 }
 0x243   :  { %824 = vmax.xlane.f32.xlu1 %v823_v61  ;;  %817 = vadd.xlane.f32.xlu0 %v816_v62 }
 0x2d0   :  { %v825_v63 = vpop.xlane.xlu1 %824  ;;  %v818_v9 = vpop.xlane.xlu0 %817 }
 0x2d1   :  { %vm834_vm4 = vcmp.ge.f32.partialorder %v822_v59, %v825_v63  ;;  %vm826_vm5 = vcmp.gt.f32.partialorder %v803_v52, %v825_v63  ;;  %vm819_vm8 = vcmp.lt.f32.partialorder %v818_v9, 4.0 }
 0x2d2   :  { %v835_v0 = vsel %vm834_vm4, -inf, %v822_v59  ;;  %v1093_v2 = vsel %vm826_vm5, 1.0, %v1313_v57  ;;  %v820_v11 = vsel %vm819_vm8, %v812_v58, %v807_v54 }
 0x2d3   :  { %v836_v1 = vsel %vm804_vm0, %v835_v0, -inf  ;;  %v829_v3 = vsel %vm804_vm0, %v1093_v2, 0.0 }
 0x2d4   :  { %837 = vmax.xlane.f32.xlu1 %v836_v1 }
 0x2d8   :  { %830 = vadd.xlane.f32.xlu1 %v829_v3 }
 0x361   :  { %v838_v5 = vpop.xlane.xlu1 %837 }
 0x362   :  { %vm839_vm6 = vcmp.gt.f32.partialorder %v803_v52, %v838_v5 }
 0x363   :  { %v1094_v6 = vsel %vm839_vm6, 1.0, %v1313_v57 }
 0x364   :  { %v842_v7 = vsel %vm804_vm0, %v1094_v6, 0.0 }
 0x365   :  { %843 = vadd.xlane.f32.xlu0 %v842_v7  ;;  %v831_v10 = vpop.xlane.xlu1 %830 }
 0x366   :  { %vm832_vm9 = vcmp.lt.f32.partialorder %v831_v10, 4.0 }
 0x367   :  { %v833_v13 = vsel %vm832_vm9, %v825_v63, %v820_v11 }
 0x3f2   :  { %v844_v12 = vpop.xlane.xlu0 %843 }
 0x3f3   :  { %vm845_vm10 = vcmp.lt.f32.partialorder %v844_v12, 4.0 }
 0x3f4   :  { %v846_v14 = vsel %vm845_vm10, %v838_v5, %v833_v13 }
 0x3f5   :  { %vm847_vm11 = vcmp.ge.f32.partialorder %v803_v52, %v846_v14  ;;  %v1027_v52 = vld [vmem:[%s1645_s8] ss:$0 sm:$0xff] }
 0x3f6   :  { %v848_v15 = vsel %vm847_vm11, %v798_v51, 0.0 }
 0x3f7   :  { %v849_v16 = vpack.c.bf16 %v848_v15, %v848_v15 }
 0x3f9   :  { %1203 = vmatmul.mubr.msk.bf16.vlgmr.msra.gmra.mrb[8].mxu0 %vm862_vm12, %v849_v16 }
 0x4cc   :  { %v900_v19 = vpop.f32.mrb[8].mxu0 }
 0x4cd   :  { %v901_v20 = vadd.f32 %v1025_v17, %v900_v19  ;;  %v1204_v21 = vpop.f32.mrb[9].mxu0 }
 0x4ce   :  { %v903_v22 = vpop.f32.mrb[10].mxu0 }
 0x4cf   :  { %v906_v23 = vmul.f32 %v1026_v18, %v901_v20  ;;  %v1205_v24 = vpop.f32.mrb[11].mxu0 }
 0x4d1   :  { %v907_v25 = vsel %vm804_vm0, %v906_v23, -inf }
 0x4d2   :  { %908 = vmax.xlane.f32.xlu1 %v907_v25 }
 0x55f   :  { %v909_v26 = vpop.xlane.xlu1 %908 }
 0x560   :  { %vm910_vm13 = vcmp.ge.f32.partialorder %v906_v23, %v909_v26 }
 0x561   :  { %v911_v27 = vsel %vm910_vm13, -inf, %v906_v23 }
 0x562   :  { %v912_v28 = vsel %vm804_vm0, %v911_v27, -inf }
 0x563   :  { %913 = vmax.xlane.f32.xlu0 %v912_v28 }
 0x5f0   :  { %v914_v29 = vpop.xlane.xlu0 %913 }
 0x5f1   :  { %vm923_vm14 = vcmp.ge.f32.partialorder %v911_v27, %v914_v29  ;;  %vm915_vm15 = vcmp.gt.f32.partialorder %v906_v23, %v914_v29 }
 0x5f2   :  { %v924_v30 = vsel %vm923_vm14, -inf, %v911_v27  ;;  %v1098_v32 = vsel %vm915_vm15, 1.0, %v1313_v57 }
 0x5f3   :  { %v925_v31 = vsel %vm804_vm0, %v924_v30, -inf  ;;  %v918_v33 = vsel %vm804_vm0, %v1098_v32, 0.0 }
 0x5f4   :  { %926 = vmax.xlane.f32.xlu1 %v925_v31 }
 0x5f8   :  { %919 = vadd.xlane.f32.xlu1 %v918_v33 }
 0x681   :  { %v927_v34 = vpop.xlane.xlu1 %926 }
 0x682   :  { %vm936_vm1 = vcmp.ge.f32.partialorder %v924_v30, %v927_v34  ;;  %vm928_vm2 = vcmp.gt.f32.partialorder %v906_v23, %v927_v34 }
 0x683   :  { %v937_v35 = vsel %vm936_vm1, -inf, %v924_v30  ;;  %v1099_v37 = vsel %vm928_vm2, 1.0, %v1313_v57 }
 0x684   :  { %v938_v36 = vsel %vm804_vm0, %v937_v35, -inf  ;;  %v931_v38 = vsel %vm804_vm0, %v1099_v37, 0.0 }
 0x685   :  { %939 = vmax.xlane.f32.xlu0 %v938_v36  ;;  %v920_v44 = vpop.xlane.xlu1 %919 }
 0x686   :  { %vm921_vm4 = vcmp.lt.f32.partialorder %v920_v44, 4.0 }
 0x687   :  { %v922_v46 = vsel %vm921_vm4, %v914_v29, %v909_v26 }
 0x689   :  { %932 = vadd.xlane.f32.xlu0 %v931_v38 }
 0x712   :  { %v940_v40 = vpop.xlane.xlu0 %939 }
 0x713   :  { %vm941_vm3 = vcmp.gt.f32.partialorder %v906_v23, %v940_v40 }
 0x714   :  { %v1100_v41 = vsel %vm941_vm3, 1.0, %v1313_v57 }
 0x715   :  { %v944_v42 = vsel %vm804_vm0, %v1100_v41, 0.0 }
 0x716   :  { %945 = vadd.xlane.f32.xlu1 %v944_v42  ;;  %v933_v45 = vpop.xlane.xlu0 %932 }
 0x717   :  { %vm934_vm5 = vcmp.lt.f32.partialorder %v933_v45, 4.0 }
 0x718   :  { %v935_v48 = vsel %vm934_vm5, %v927_v34, %v922_v46 }
 0x7a3   :  { %v946_v47 = vpop.xlane.xlu1 %945 }
 0x7a4   :  { %vm947_vm6 = vcmp.lt.f32.partialorder %v946_v47, 4.0 }
 0x7a5   :  { %v948_v49 = vsel %vm947_vm6, %v940_v40, %v935_v48 }
 0x7a6   :  { %vm949_vm7 = vcmp.ge.f32.partialorder %v906_v23, %v948_v49 }
 0x7a7   :  { %v950_v50 = vsel %vm949_vm7, %v901_v20, 0.0 }
 0x7a8   :  { %v951_v51 = vpack.c.bf16 %v950_v50, %v950_v50 }
 0x7aa   :  { %1211 = vmatmul.mubr.msk.bf16.vlgmr.msra.gmra.mrb[8].mxu1 %vm862_vm12, %v951_v51 }
 0x87d   :  { %v1001_v53 = vpop.f32.mrb[8].mxu1 }
 0x87e   :  { %v1002_v54 = vadd.f32 %v1027_v52, %v1001_v53  ;;  %v1212_v55 = vpop.f32.mrb[9].mxu1 }
 0x87f   :  { %v1004_v56 = vpop.f32.mrb[10].mxu1 }
 0x880   :  { %v1007_v57 = vpack.c.bf16 %v1002_v54, %v1002_v54  ;;  %v1213_v58 = vpop.f32.mrb[11].mxu1 }
 0x882   :  { %1008 = vst [vmem:[#allocation2] sm:$0x1] %v1007_v57 }
 0x883   :  { %1299 = shalt.err (!%p1296_p4)
}
 0x884   :  { %s1300_s29 = scalar_lea.hbm %s1646_s9, 16 }
 0x885   :  { %p1301_p5 = scmp.ne.s32.totalorder %s1646_s9, %s1300_s29  ;;  %p1304_p6 = scmp.lt.u32.totalorder %s1300_s29, %s1646_s9 }
 0x887   :  { %p1306_p7 = pnand %p1304_p6, %p1301_p5 }
 0x889   :  { %1309 = shalt.err (!%p1306_p7)
}
 0x88a   :  { %1018 = dma.vmem_to_hbm [thread:$0]  %s1016_s26, 16, %s1646_s9, [#allocation3]  }
 0x88b   :  { %1310 = dma.done.wait [#allocation3], 16  }
 0x88c   :  { %1311 = vsyncadd [#allocation3], 4294967280 }
 0x88d   :  { %1022 = vsyncpa [#allocation3], 1 }

</bundles_post_ra>
